<compile_context>
chip_gen: v5e
topology: v5e:2x2
jax: 0.10.0
libtpu: 0.0.40
codegen_flags: <defaults>
</compile_context>

<pallas_src>
import jax
import jax.numpy as jnp
from jax.experimental import pallas as pl
from jax.experimental.pallas import tpu as pltpu


def _make_textcnn_kernel(filter_sizes, *, B, S, E, V, F, kmax, npad):
    n_branch = len(filter_sizes)
    BS = B * S

    def kernel(tok_ref, table_ref, wpack_ref, bpack_ref, fcw_ref, fcb_ref,
               out_ref):
        # ---- 1) embedding gather fused in-kernel as a one-hot MXU matmul ----
        tok = tok_ref[...]                                        # (BS, 1) i32
        vid = jax.lax.broadcasted_iota(jnp.int32, (BS, V), 1)
        onehot = (vid == tok).astype(jnp.float32)                 # (BS, V)
        emb = jnp.dot(onehot, table_ref[...],
                      preferred_element_type=jnp.float32)         # (BS, E)

        # ---- 2) fused unfold via circular sublane rolls (XLU) ----
        # Window row r = [emb[r], emb[r+1], ..., emb[r+kmax-1]] (mod BS).
        # Wrapped / cross-batch rows are only ever consumed at positions that
        # are masked to -inf below, so the circular roll is exact.
        taps = [emb]
        for i in range(1, kmax):
            taps.append(pltpu.roll(emb, shift=BS - i, axis=0))    # row r -> emb[r+i]
        win = jnp.concatenate(taps, axis=-1)                      # (BS, kmax*E)

        # ---- 3) all conv branches in a single K=kmax*E MXU matmul ----
        conv = jnp.dot(win, wpack_ref[...],
                       preferred_element_type=jnp.float32)        # (BS, npad)
        conv = conv.reshape(B, S, npad)

        # ---- 4) mask out-of-range windows per branch, then max-pool over S ----
        pos = jax.lax.broadcasted_iota(jnp.int32, (S, npad), 0)
        col = jax.lax.broadcasted_iota(jnp.int32, (S, npad), 1)
        limit = jnp.full((S, npad), S, jnp.int32)                 # pad cols: all valid
        for bi in reversed(range(n_branch)):
            limit = jnp.where(col < (bi + 1) * F,
                              S - filter_sizes[bi] + 1, limit)
        valid = pos < limit                                       # (S, npad)
        masked = jnp.where(valid[None, :, :], conv, -jnp.inf)
        pooled = jnp.max(masked, axis=1)                          # (B, npad)

        # ---- 5) bias + ReLU commuted past the max-pool (exact) ----
        feat = jnp.maximum(pooled + bpack_ref[...], 0.0)          # (B, npad)

        # ---- 6) dropout (eval) == identity; final FC on lane-aligned slab ----
        logits = jnp.dot(feat, fcw_ref[...],
                         preferred_element_type=jnp.float32) + fcb_ref[...]
        out_ref[...] = logits.astype(out_ref.dtype)

    return kernel


def textcnn_forward(tokens, emb_table, conv_params, fc_w, fc_b, filter_sizes):
    """tokens: (B, S) int32.  conv_params: list of (w_flat (F, k*E), b (1, F))."""
    B, S = tokens.shape
    V, E = emb_table.shape
    F = conv_params[0][0].shape[0]
    n_branch = len(filter_sizes)
    num_labels = fc_w.shape[0]
    kmax = max(filter_sizes)
    kdim = kmax * E                                  # 4*32 = 128 (one lane width)
    npad = pl.cdiv(n_branch * F, 128) * 128          # 24 -> 128 (lane-aligned slab)

    # Pack all conv weights into one zero-padded RHS and the biases / FC weight
    # into lane-aligned slabs (branch bi owns rows [0, k*E) and cols [bi*F, (bi+1)*F)).
    wpack = jnp.zeros((kdim, npad), jnp.float32)
    bpack = jnp.zeros((1, npad), jnp.float32)
    for bi, ((w, b), k) in enumerate(zip(conv_params, filter_sizes)):
        wpack = wpack.at[: k * E, bi * F:(bi + 1) * F].set(w.T)
        bpack = bpack.at[:, bi * F:(bi + 1) * F].set(b)
    fcw_pad = jnp.zeros((npad, num_labels), jnp.float32)
    fcw_pad = fcw_pad.at[: n_branch * F, :].set(fc_w.T)

    tok2d = tokens.reshape(B * S, 1).astype(jnp.int32)

    kernel = _make_textcnn_kernel(tuple(filter_sizes), B=B, S=S, E=E, V=V, F=F,
                                  kmax=kmax, npad=npad)

    inputs = [tok2d, emb_table, wpack, bpack, fcw_pad, fc_b]

    def full_spec(x):
        nd = x.ndim
        return pl.BlockSpec(x.shape, lambda i, _nd=nd: (0,) * _nd)

    return pl.pallas_call(
        kernel,
        out_shape=jax.ShapeDtypeStruct((B, num_labels), jnp.float32),
        grid=(1,),
        in_specs=[full_spec(x) for x in inputs],
        out_specs=pl.BlockSpec((B, num_labels), lambda i: (0, 0)),
        compiler_params=pltpu.CompilerParams(
            dimension_semantics=("arbitrary",)),
    )(*inputs)


def _reference_forward(tokens, emb_table, conv_params, fc_w, fc_b, filter_sizes):
    """Pure-JAX reference matching the PyTorch module semantics exactly."""
    emb = emb_table[tokens]
    B, S, E = emb.shape
    feats = []
    for (w, b), k in zip(conv_params, filter_sizes):
        L = S - k + 1
        win = jnp.concatenate([emb[:, i:i + L, :] for i in range(k)], axis=-1)
        conv = jnp.einsum("bld,fd->blf", win, w) + b[None, :, :]
        conv = jnp.maximum(conv, 0.0)
        feats.append(jnp.max(conv, axis=1))
    feat = jnp.concatenate(feats, axis=-1)
    return feat @ fc_w.T + fc_b


if __name__ == "__main__":
    # --- config (small, consistent with the module) ---
    vocab_size = 32
    embedding_size = 32
    seq_len = 16
    batch = 2
    nums_filters = 8
    filter_sizes = (2, 3, 4)
    nums_label = 4

    key = jax.random.PRNGKey(0)
    k_emb, k_tok, k_fc, *k_convs = jax.random.split(key, 3 + len(filter_sizes))

    # Embedding table; padding_idx = vocab_size - 1 row is zero (as nn.Embedding).
    emb_table = 0.1 * jax.random.normal(k_emb, (vocab_size, embedding_size),
                                        dtype=jnp.float32)
    emb_table = emb_table.at[vocab_size - 1].set(0.0)

    tokens = jax.random.randint(k_tok, (batch, seq_len), 0, vocab_size,
                                dtype=jnp.int32)

    # Conv2d(1, F, (k, E)) weights flattened to (F, k*E); biases kept 2-D (1, F).
    conv_params = []
    for kk, kconv in zip(filter_sizes, k_convs):
        kw, kb = jax.random.split(kconv)
        w = 0.1 * jax.random.normal(kw, (nums_filters, kk * embedding_size),
                                    dtype=jnp.float32)
        b = 0.1 * jax.random.normal(kb, (1, nums_filters), dtype=jnp.float32)
        conv_params.append((w, b))

    # Linear(F * len(filter_sizes), nums_label)
    kfw, kfb = jax.random.split(k_fc)
    fc_w = 0.1 * jax.random.normal(
        kfw, (nums_label, nums_filters * len(filter_sizes)), dtype=jnp.float32)
    fc_b = 0.1 * jax.random.normal(kfb, (1, nums_label), dtype=jnp.float32)

    out = textcnn_forward(tokens, emb_table, conv_params, fc_w, fc_b,
                          filter_sizes)
    out = jax.block_until_ready(out)

    ref = _reference_forward(tokens, emb_table, conv_params, fc_w, fc_b,
                             filter_sizes)
    assert out.shape == (batch, nums_label)
    assert jnp.allclose(out, ref, rtol=1e-2, atol=1e-2), (out, ref)

    print("KERNEL_OK")
</pallas_src>

<mosaic_0001>
module attributes {stable_mosaic.version = 11 : i64} {
  func.func @kernel(%arg0: i32, %arg1: memref<32x1xi32, #tpu.memory_space<vmem>>, %arg2: memref<32x32xf32, #tpu.memory_space<vmem>>, %arg3: memref<128x128xf32, #tpu.memory_space<vmem>>, %arg4: memref<1x128xf32, #tpu.memory_space<vmem>>, %arg5: memref<128x4xf32, #tpu.memory_space<vmem>>, %arg6: memref<1x4xf32, #tpu.memory_space<vmem>>, %arg7: memref<2x4xf32, #tpu.memory_space<vmem>>) attributes {dimension_semantics = [#tpu.dimension_semantics<arbitrary>], iteration_bounds = array<i64: 1>, scalar_prefetch = 0 : i64, scratch_operands = 0 : i64, tpu.core_type = #tpu.core_type<tc>, window_params = [{pipeline_mode = #tpu.pipeline_mode<synchronous>, transform_indices = @transform_0, window_bounds = array<i64: 32, 1>}, {pipeline_mode = #tpu.pipeline_mode<synchronous>, transform_indices = @transform_1, window_bounds = array<i64: 32, 32>}, {pipeline_mode = #tpu.pipeline_mode<synchronous>, transform_indices = @transform_2, window_bounds = array<i64: 128, 128>}, {pipeline_mode = #tpu.pipeline_mode<synchronous>, transform_indices = @transform_3, window_bounds = array<i64: 1, 128>}, {pipeline_mode = #tpu.pipeline_mode<synchronous>, transform_indices = @transform_4, window_bounds = array<i64: 128, 4>}, {pipeline_mode = #tpu.pipeline_mode<synchronous>, transform_indices = @transform_5, window_bounds = array<i64: 1, 4>}, {pipeline_mode = #tpu.pipeline_mode<synchronous>, transform_indices = @transform_6, window_bounds = array<i64: 2, 4>}]} {
    %c0 = arith.constant 0 : index
    %c0_0 = arith.constant 0 : index
    %0 = vector.load %arg1[%c0, %c0_0] : memref<32x1xi32, #tpu.memory_space<vmem>>, vector<32x1xi32>
    %1 = tpu.iota {dimensions = array<i32: 1>} : vector<32x32xi32>
    %2 = vector.broadcast %0 : vector<32x1xi32> to vector<32x32xi32>
    %3 = arith.cmpi eq, %1, %2 : vector<32x32xi32>
    %4 = arith.extui %3 : vector<32x32xi1> to vector<32x32xi32>
    %5 = arith.sitofp %4 : vector<32x32xi32> to vector<32x32xf32>
    %c0_1 = arith.constant 0 : index
    %c0_2 = arith.constant 0 : index
    %6 = vector.load %arg2[%c0_1, %c0_2] : memref<32x32xf32, #tpu.memory_space<vmem>>, vector<32x32xf32>
    %cst = arith.constant dense<0.000000e+00> : vector<32x32xf32>
    %7 = tpu.matmul %5, %6, %cst {dimension_numbers = #tpu.dot_dimension_numbers<[1], [0], [0], [1], [0, 0, 1, 1], [], []>} : vector<32x32xf32>, vector<32x32xf32>, vector<32x32xf32> -> vector<32x32xf32>
    %c31_i32 = arith.constant 31 : i32
    %8 = tpu.dynamic_rotate %7 by %c31_i32 dim 0 : vector<32x32xf32>, i32 -> vector<32x32xf32>
    %c30_i32 = arith.constant 30 : i32
    %9 = tpu.dynamic_rotate %7 by %c30_i32 dim 0 : vector<32x32xf32>, i32 -> vector<32x32xf32>
    %c29_i32 = arith.constant 29 : i32
    %10 = tpu.dynamic_rotate %7 by %c29_i32 dim 0 : vector<32x32xf32>, i32 -> vector<32x32xf32>
    %11 = tpu.concatenate %7, %8, %9, %10 in 1 : vector<32x32xf32>, vector<32x32xf32>, vector<32x32xf32>, vector<32x32xf32> -> vector<32x128xf32>
    %c0_3 = arith.constant 0 : index
    %c0_4 = arith.constant 0 : index
    %12 = vector.load %arg3[%c0_3, %c0_4] : memref<128x128xf32, #tpu.memory_space<vmem>>, vector<128x128xf32>
    %cst_5 = arith.constant dense<0.000000e+00> : vector<32x128xf32>
    %13 = tpu.matmul %11, %12, %cst_5 {dimension_numbers = #tpu.dot_dimension_numbers<[1], [0], [0], [1], [0, 0, 1, 1], [], []>} : vector<32x128xf32>, vector<128x128xf32>, vector<32x128xf32> -> vector<32x128xf32>
    %14 = vector.shape_cast %13 : vector<32x128xf32> to vector<2x16x128xf32>
    %15 = tpu.iota {dimensions = array<i32: 0>} : vector<16x128xi32>
    %16 = tpu.iota {dimensions = array<i32: 1>} : vector<16x128xi32>
    %c16_i32 = arith.constant 16 : i32
    %17 = vector.broadcast %c16_i32 : i32 to vector<16x128xi32>
    %c24_i32 = arith.constant 24 : i32
    %18 = vector.broadcast %c24_i32 : i32 to vector<16x128xi32>
    %19 = arith.cmpi slt, %16, %18 : vector<16x128xi32>
    %c13_i32 = arith.constant 13 : i32
    %20 = vector.broadcast %c13_i32 : i32 to vector<16x128xi32>
    %21 = arith.select %19, %20, %17 : vector<16x128xi1>, vector<16x128xi32>
    %c16_i32_6 = arith.constant 16 : i32
    %22 = vector.broadcast %c16_i32_6 : i32 to vector<16x128xi32>
    %23 = arith.cmpi slt, %16, %22 : vector<16x128xi32>
    %c14_i32 = arith.constant 14 : i32
    %24 = vector.broadcast %c14_i32 : i32 to vector<16x128xi32>
    %25 = arith.select %23, %24, %21 : vector<16x128xi1>, vector<16x128xi32>
    %c8_i32 = arith.constant 8 : i32
    %26 = vector.broadcast %c8_i32 : i32 to vector<16x128xi32>
    %27 = arith.cmpi slt, %16, %26 : vector<16x128xi32>
    %c15_i32 = arith.constant 15 : i32
    %28 = vector.broadcast %c15_i32 : i32 to vector<16x128xi32>
    %29 = arith.select %27, %28, %25 : vector<16x128xi1>, vector<16x128xi32>
    %30 = arith.cmpi slt, %15, %29 : vector<16x128xi32>
    %31 = vector.shape_cast %30 : vector<16x128xi1> to vector<1x16x128xi1>
    %cst_7 = arith.constant 0xFF800000 : f32
    %32 = vector.shape_cast %31 : vector<1x16x128xi1> to vector<1x16x128xi1>
    %33 = vector.broadcast %32 : vector<1x16x128xi1> to vector<2x16x128xi1>
    %34 = vector.broadcast %cst_7 : f32 to vector<2x16x128xf32>
    %35 = arith.select %33, %14, %34 : vector<2x16x128xi1>, vector<2x16x128xf32>
    %cst_8 = arith.constant dense<0xFF800000> : vector<2x128xf32>
    %36 = vector.multi_reduction <maximumf>, %35, %cst_8 [1] : vector<2x16x128xf32> to vector<2x128xf32>
    %c0_9 = arith.constant 0 : index
    %c0_10 = arith.constant 0 : index
    %37 = vector.load %arg4[%c0_9, %c0_10] : memref<1x128xf32, #tpu.memory_space<vmem>>, vector<1x128xf32>
    %38 = vector.broadcast %37 : vector<1x128xf32> to vector<2x128xf32>
    %39 = arith.addf %36, %38 : vector<2x128xf32>
    %cst_11 = arith.constant 0.000000e+00 : f32
    %40 = vector.broadcast %cst_11 : f32 to vector<2x128xf32>
    %41 = arith.maximumf %39, %40 : vector<2x128xf32>
    %c0_12 = arith.constant 0 : index
    %c0_13 = arith.constant 0 : index
    %42 = vector.load %arg5[%c0_12, %c0_13] : memref<128x4xf32, #tpu.memory_space<vmem>>, vector<128x4xf32>
    %cst_14 = arith.constant dense<0.000000e+00> : vector<2x4xf32>
    %43 = tpu.matmul %41, %42, %cst_14 {dimension_numbers = #tpu.dot_dimension_numbers<[1], [0], [0], [1], [0, 0, 1, 1], [], []>} : vector<2x128xf32>, vector<128x4xf32>, vector<2x4xf32> -> vector<2x4xf32>
    %c0_15 = arith.constant 0 : index
    %c0_16 = arith.constant 0 : index
    %44 = vector.load %arg6[%c0_15, %c0_16] : memref<1x4xf32, #tpu.memory_space<vmem>>, vector<1x4xf32>
    %45 = vector.broadcast %44 : vector<1x4xf32> to vector<2x4xf32>
    %46 = arith.addf %43, %45 : vector<2x4xf32>
    %c0_17 = arith.constant 0 : index
    %c0_18 = arith.constant 0 : index
    %47 = vector.load %arg7[%c0_17, %c0_18] : memref<2x4xf32, #tpu.memory_space<vmem>>, vector<2x4xf32>
    tpu.vector_store %arg7[%c0_17, %c0_18], %46 {strides = array<i32>} : memref<2x4xf32, #tpu.memory_space<vmem>>, vector<2x4xf32>,
    return
  }
  func.func @transform_0(%arg0: i32) -> (i32, i32) {
    %c0_i32 = arith.constant 0 : i32
    %c0_i32_0 = arith.constant 0 : i32
    %c0_i32_1 = arith.constant 0 : i32
    return %c0_i32, %c0_i32_0 : i32, i32
  }
  func.func @transform_1(%arg0: i32) -> (i32, i32) {
    %c0_i32 = arith.constant 0 : i32
    %c0_i32_0 = arith.constant 0 : i32
    %c0_i32_1 = arith.constant 0 : i32
    return %c0_i32, %c0_i32_0 : i32, i32
  }
  func.func @transform_2(%arg0: i32) -> (i32, i32) {
    %c0_i32 = arith.constant 0 : i32
    %c0_i32_0 = arith.constant 0 : i32
    %c0_i32_1 = arith.constant 0 : i32
    return %c0_i32, %c0_i32_0 : i32, i32
  }
  func.func @transform_3(%arg0: i32) -> (i32, i32) {
    %c0_i32 = arith.constant 0 : i32
    %c0_i32_0 = arith.constant 0 : i32
    %c0_i32_1 = arith.constant 0 : i32
    return %c0_i32, %c0_i32_0 : i32, i32
  }
  func.func @transform_4(%arg0: i32) -> (i32, i32) {
    %c0_i32 = arith.constant 0 : i32
    %c0_i32_0 = arith.constant 0 : i32
    %c0_i32_1 = arith.constant 0 : i32
    return %c0_i32, %c0_i32_0 : i32, i32
  }
  func.func @transform_5(%arg0: i32) -> (i32, i32) {
    %c0_i32 = arith.constant 0 : i32
    %c0_i32_0 = arith.constant 0 : i32
    %c0_i32_1 = arith.constant 0 : i32
    return %c0_i32, %c0_i32_0 : i32, i32
  }
  func.func @transform_6(%arg0: i32) -> (i32, i32) {
    %c0_i32 = arith.constant 0 : i32
    %c0_i32_0 = arith.constant 0 : i32
    %c0_i32_1 = arith.constant 0 : i32
    return %c0_i32, %c0_i32_0 : i32, i32
  }
}

</mosaic_0001>

<bundles_post_ra>
// kernel: tpu_custom_call.1
= control target key start
LH: loop header
LB: loop body
LE: loop exit
PB: predicated region body
PF: predicated region fallthrough
CT: control target
= control target key end

     0   :  { %v415_v2 = vmov 0   ;;  %s666_s0 = inlined_call_operand.vmem [shape: s32[32,1], index: 0, kind: input, shape index: {}]   ;;  %s667_s1 = inlined_call_operand.vmem [shape: f32[32,32], index: 1, kind: input, shape index: {}]   ;;  %s668_s2 = inlined_call_operand.vmem [shape: f32[128,128], index: 2, kind: input, shape index: {}]   ;;  %s669_s3 = inlined_call_operand.vmem [shape: f32[1,128], index: 3, kind: input, shape index: {}]   ;;  %s670_s4 = inlined_call_operand.vmem [shape: f32[128,4], index: 4, kind: input, shape index: {}]   ;;  %s671_s5 = inlined_call_operand.vmem [shape: f32[1,4], index: 5, kind: input, shape index: {}]   ;;  %s672_s6 = inlined_call_operand.hbm [shape: f32[2,4], index: 6, kind: output, shape index: {}]  }
   0x1   :  { %v24_v0 = vld [vmem:[%s666_s0] sm:$0xff]  ;;  %v26_v1 = vld [vmem:[%s666_s0 + $0x10] sm:$0xff]  ;;  %370 = vset.pattern.permute.xlu0 %v415_v2  ;;  %371 = vset.pattern.permute.xlu1 %v415_v2  ;;  %v57_v3 = vld [vmem:[%s667_s1 + $0x18] sm:$0xff] }
   0x2   :  { %31 = vperm.xlu0 %370, %v24_v0   ;;  %37 = vperm.xlu1 %371, %v26_v1   ;;  %v56_v4 = vld [vmem:[%s667_s1 + $0x10] sm:$0xff] }
   0x3   :  { %83 = vmatpush.msra.mxu0 %v57_v3 }
   0x4   :  { %11 = vsyncpa [#allocation3], 0  ;;  %v55_v5 = vld [vmem:[%s667_s1 + $0x8] sm:$0xff]  ;;  %v27_v7 = vld [vmem:[%s666_s0 + $0x18] sm:$0xff]  ;;  %v28_v9 = vlaneseq  ;;  %vm58_vm0 = vcmask 261120   ;;  %v416_v12 = vmov 0.0  }
   0x5   :  { %84 = vmatpush.msra.mxu0 %v56_v4  ;;  %v25_v6 = vld [vmem:[%s666_s0 + $0x8] sm:$0xff]  ;;  %v54_v8 = vld [vmem:[%s667_s1] sm:$0xff]  ;;  %v206_v24 = vld [vmem:[%s668_s2 + $0x78] sm:$0xff]  ;;  %s417_s19 = smov 96   ;;  %s418_s20 = smov 32   ;;  %vm181_vm8 = vcmask 523264  }
   0x6   :  { %v481_v10 = vand.u32 127, %v28_v9  ;;  %v497_v23 = vshrl.u32 %v28_v9, 7  ;;  %v205_v25 = vld [vmem:[%s668_s2 + $0x70] sm:$0xff]  ;;  %347 = vmatpush.msra.mxu3 %v206_v24  ;;  %207 = vmatpush.msra.mxu1 %v206_v24  ;;  %v204_v29 = vld [vmem:[%s668_s2 + $0x68] sm:$0xff]  ;;  %v203_v34 = vld [vmem:[%s668_s2 + $0x60] sm:$0xff]  ;;  %s419_s21 = smov 64  }
   0x7   :  { %85 = vmatpush.msra.mxu0 %v55_v5  ;;  %v202_v56 = vld [vmem:[%s668_s2 + $0x58] sm:$0xff]  ;;  %v201_v57 = vld [vmem:[%s668_s2 + $0x50] sm:$0xff]  ;;  %v200_v58 = vld [vmem:[%s668_s2 + $0x48] sm:$0xff]  ;;  %vm186_vm9 = vcmask 785408   ;;  %vm298_vm15 = vcmask 1041409   ;;  %s421_s27 = smov [#allocation2]  }
   0x8   :  { %vm106_vm5 = vcmp.lt.s32.totalorder %v497_v23, 7  ;;  %348 = vmatpush.msra.mxu3 %v205_v25  ;;  %208 = vmatpush.msra.mxu1 %v205_v25  ;;  %vm124_vm6 = vcmp.lt.s32.totalorder %v497_v23, 5  ;;  %vm115_vm7 = vcmp.lt.s32.totalorder %v497_v23, 6  ;;  %v199_v59 = vld [vmem:[%s668_s2 + $0x40] sm:$0xff]  ;;  %v198_v60 = vld [vmem:[%s668_s2 + $0x38] sm:$0xff]  ;;  %v197_v61 = vld [vmem:[%s668_s2 + $0x30] sm:$0xff] }
   0x9   :  { %86 = vmatpush.msra.mxu0 %v54_v8  ;;  %v196_v62 = vld [vmem:[%s668_s2 + $0x28] sm:$0xff]  ;;  %v195_v63 = vld [vmem:[%s668_s2 + $0x20] sm:$0xff]  ;;  %v194_v0 = vld [vmem:[%s668_s2 + $0x18] sm:$0xff]  ;;  %vm237_vm10 = vcmp.lt.s32.totalorder %v481_v10, 24  ;;  %vm239_vm11 = vcmp.lt.s32.totalorder %v481_v10, 16  ;;  %vm241_vm12 = vcmp.lt.s32.totalorder %v481_v10, 8 }
   0xa   :  { %34 = vperm.xlu0 %370, %v25_v6   ;;  %40 = vperm.xlu1 %371, %v27_v7   ;;  %v193_v1 = vld [vmem:[%s668_s2 + $0x10] sm:$0xff]  ;;  %v192_v2 = vld [vmem:[%s668_s2 + $0x8] sm:$0xff]  ;;  %v191_v3 = vld [vmem:[%s668_s2] sm:$0xff]  ;;  %s328_s28 = sshll.u32 %s421_s27, 4  ;;  %s329_s28 = int_to_ptr.vmem [resolvable:$true] %s328_s28 }
   0xb   :  { %349 = vmatpush.msra.mxu3 %v204_v29  ;;  %209 = vmatpush.msra.mxu1 %v204_v29 }
   0xd   :  { %350 = vmatpush.msra.mxu3 %v203_v34  ;;  %210 = vmatpush.msra.mxu1 %v203_v34  ;;  %v290_v34 = vld [vmem:[%s670_s4 + $0x78] sm:$0xff] }
   0xe   :  { %301 = vmatpush.msra.mxu2 %v290_v34 }
   0xf   :  { %351 = vmatpush.msra.mxu3 %v202_v56  ;;  %211 = vmatpush.msra.mxu1 %v202_v56 }
  0x11   :  { %352 = vmatpush.msra.mxu3 %v201_v57  ;;  %212 = vmatpush.msra.mxu1 %v201_v57 }
  0x13   :  { %353 = vmatpush.msra.mxu3 %v200_v58  ;;  %213 = vmatpush.msra.mxu1 %v200_v58 }
  0x15   :  { %354 = vmatpush.msra.mxu3 %v199_v59  ;;  %214 = vmatpush.msra.mxu1 %v199_v59 }
  0x17   :  { %355 = vmatpush.msra.mxu3 %v198_v60  ;;  %215 = vmatpush.msra.mxu1 %v198_v60 }
  0x19   :  { %356 = vmatpush.msra.mxu3 %v197_v61  ;;  %216 = vmatpush.msra.mxu1 %v197_v61 }
  0x1b   :  { %357 = vmatpush.msra.mxu3 %v196_v62  ;;  %217 = vmatpush.msra.mxu1 %v196_v62 }
  0x1d   :  { %358 = vmatpush.msra.mxu3 %v195_v63  ;;  %218 = vmatpush.msra.mxu1 %v195_v63 }
  0x1f   :  { %359 = vmatpush.msra.mxu3 %v194_v0  ;;  %219 = vmatpush.msra.mxu1 %v194_v0 }
  0x21   :  { %360 = vmatpush.msra.mxu3 %v193_v1  ;;  %220 = vmatpush.msra.mxu1 %v193_v1 }
  0x23   :  { %361 = vmatpush.msra.mxu3 %v192_v2  ;;  %221 = vmatpush.msra.mxu1 %v192_v2 }
  0x25   :  { %362 = vmatpush.msra.mxu3 %v191_v3  ;;  %222 = vmatpush.msra.mxu1 %v191_v3 }
  0x74   :  { %v32_v11 = vpop.permute.xlu0 %31  ;;  %v38_v15 = vpop.permute.xlu1 %37 }
  0x75   :  { %vm42_vm1 = vcmp.eq.s32.totalorder %v481_v10, %v32_v11  ;;  %vm44_vm3 = vcmp.eq.s32.totalorder %v481_v10, %v38_v15 }
  0x76   :  { %v339_v13 = vsel %vm42_vm1, 1.0, %v416_v12  ;;  %v341_v17 = vsel %vm44_vm3, 1.0, %v416_v12 }
  0x77   :  { %343 = vmatmul.msk.f32.vlgmr.msra.gmra.mxu0 %vm58_vm0, %v339_v13 }
  0x7c   :  { %v35_v14 = vpop.permute.xlu0 %34  ;;  %v41_v18 = vpop.permute.xlu1 %40 }
  0x7d   :  { %vm43_vm2 = vcmp.eq.s32.totalorder %v481_v10, %v35_v14  ;;  %vm45_vm4 = vcmp.eq.s32.totalorder %v481_v10, %v41_v18 }
  0x7e   :  { %v340_v16 = vsel %vm43_vm2, 1.0, %v416_v12  ;;  %v342_v19 = vsel %vm45_vm4, 1.0, %v416_v12 }
  0x7f   :  { %344 = vmatmul.msk.f32.gmra.mxu0 %vm58_vm0, %v340_v16 }
  0x87   :  { %345 = vmatmul.msk.f32.gmra.mxu0 %vm58_vm0, %v341_v17 }
  0x8f   :  { %346 = vmatmul.msk.f32.gmra.mxu0 %vm58_vm0, %v342_v19 }
  0xf4   :  { %v491_v20 = vpop.f32.mrf.mxu0 }
  0xf5   :  { %v100_v27 = vrot.slane %v491_v20, 1  ;;  %v120_v40 = vrot.slane %v491_v20, 3  ;;  %v111_v46 = vrot.slane %v491_v20, 2 }
  0xfc   :  { %v493_v21 = vpop.f32.mrf.mxu0 }
  0xfd   :  { %v101_v26 = vrot.slane %v493_v21, 1  ;;  %v121_v41 = vrot.slane %v493_v21, 3  ;;  %v112_v43 = vrot.slane %v493_v21, 2 }
  0xff   :  { %v109_v38 = vsel %vm106_vm5, %v100_v27, %v101_v26  ;;  %v127_v47 = vsel %vm124_vm6, %v120_v40, %v121_v41  ;;  %v118_v51 = vsel %vm115_vm7, %v111_v46, %v112_v43 }
 0x104   :  { %v495_v22 = vpop.f32.mrf.mxu0 }
 0x105   :  { %v102_v30 = vrot.slane %v495_v22, 1  ;;  %v122_v31 = vrot.slane %v495_v22, 3  ;;  %v113_v44 = vrot.slane %v495_v22, 2 }
 0x107   :  { %v108_v50 = vsel %vm106_vm5, %v101_v26, %v102_v30  ;;  %v126_v53 = vsel %vm124_vm6, %v121_v41, %v122_v31  ;;  %v117_v55 = vsel %vm115_vm7, %v112_v43, %v113_v44  ;;  %v282_v41 = vld [vmem:[%s670_s4 + $0x38] sm:$0xff]  ;;  %v280_v43 = vld [vmem:[%s670_s4 + $0x28] sm:$0xff] }
 0x10c   :  { %v507_v28 = vpop.f32.mrf.mxu0 }
 0x10d   :  { %v103_v32 = vrot.slane %v507_v28, 1  ;;  %v123_v33 = vrot.slane %v507_v28, 3  ;;  %v114_v42 = vrot.slane %v507_v28, 2 }
 0x10f   :  { %v125_v35 = vsel %vm124_vm6, %v122_v31, %v123_v33  ;;  %v110_v36 = vsel %vm106_vm5, %v103_v32, %v100_v27  ;;  %v107_v37 = vsel %vm106_vm5, %v102_v30, %v103_v32  ;;  %v128_v45 = vsel %vm124_vm6, %v123_v33, %v120_v40  ;;  %v283_v40 = vld [vmem:[%s670_s4 + $0x40] sm:$0xff] }
 0x110   :  { %169 = vrot.lane.b32.xlu0 %v125_v35, %s417_s19  ;;  %139 = vrot.lane.b32.xlu1 %v110_v36, %s418_s20  ;;  %v372_v39 = vpack.i.bf16 %v109_v38, %v107_v37  ;;  %v116_v48 = vsel %vm115_vm7, %v113_v44, %v114_v42  ;;  %v382_v49 = vpack.i.bf16 %v128_v45, %v127_v47  ;;  %v289_v35 = vld [vmem:[%s670_s4 + $0x70] sm:$0xff]  ;;  %v287_v36 = vld [vmem:[%s670_s4 + $0x60] sm:$0xff] }
 0x111   :  { %v377_v52 = vpack.i.bf16 %v118_v51, %v116_v48  ;;  %v119_v54 = vsel %vm115_vm7, %v114_v42, %v111_v46  ;;  %302 = vmatpush.msra.mxu2 %v289_v35  ;;  %v286_v37 = vld [vmem:[%s670_s4 + $0x58] sm:$0xff]  ;;  %v285_v38 = vld [vmem:[%s670_s4 + $0x50] sm:$0xff]  ;;  %v279_v44 = vld [vmem:[%s670_s4 + $0x20] sm:$0xff]  ;;  %v420_v48 = vmov 16  }
 0x112   :  { %373 = vrot.lane.b32.xlu2 %v372_v39, %s418_s20  ;;  %v284_v39 = vld [vmem:[%s670_s4 + $0x48] sm:$0xff]  ;;  %v281_v42 = vld [vmem:[%s670_s4 + $0x30] sm:$0xff]  ;;  %v278_v45 = vld [vmem:[%s670_s4 + $0x18] sm:$0xff] }
 0x113   :  { %v277_v46 = vld [vmem:[%s670_s4 + $0x10] sm:$0xff]  ;;  %v276_v47 = vld [vmem:[%s670_s4 + $0x8] sm:$0xff] }
 0x118   :  { %383 = vrot.lane.b32.xlu0 %v382_v49, %s417_s19  ;;  %135 = vrot.lane.b32.xlu1 %v108_v50, %s418_s20  ;;  %v238_v49 = vsel %vm237_vm10, 13, %v420_v48  ;;  %v275_v50 = vld [vmem:[%s670_s4] sm:$0xff] }
 0x11a   :  { %378 = vrot.lane.b32.xlu2 %v377_v52, %s419_s21  ;;  %v240_v52 = vsel %vm239_vm11, 14, %v238_v49 }
 0x120   :  { %167 = vrot.lane.b32.xlu0 %v126_v53, %s417_s19 }
 0x122   :  { %155 = vrot.lane.b32.xlu2 %v119_v54, %s419_s21  ;;  %v236_v54 = vadd.s32 8, %v497_v23 }
 0x12a   :  { %151 = vrot.lane.b32.xlu2 %v117_v55, %s419_s21  ;;  %v242_v55 = vsel %vm241_vm12, 15, %v240_v52 }
 0x12b   :  { %vm243_vm13 = vcmp.lt.s32.totalorder %v497_v23, %v242_v55  ;;  %vm244_vm14 = vcmp.lt.s32.totalorder %v236_v54, %v242_v55  ;;  %v387_v23 = vld [vmem:[%s669_s3] ss:$0 sm:$0xff]  ;;  %s330_s3 = sshll.u32 %s672_s6, 4  ;;  %s331_s3 = int_to_ptr.hbm [resolvable:$true] %s330_s3 }
 0x16c   :  { %v374_v4 = vpop.permute.xlu2 %373 }
 0x16d   :  { %v375_v6 = vunpack.i.l.bf16 %v374_v4  ;;  %v376_v14 = vunpack.i.h.bf16 %v374_v4 }
 0x16f   :  { %v179_v8 = vsel %vm58_vm0, %v495_v22, %v375_v6  ;;  %v177_v25 = vsel %vm58_vm0, %v491_v20, %v376_v14 }
 0x174   :  { %v379_v5 = vpop.permute.xlu2 %378 }
 0x175   :  { %v380_v7 = vunpack.i.l.bf16 %v379_v5  ;;  %v381_v15 = vunpack.i.h.bf16 %v379_v5 }
 0x177   :  { %v184_v11 = vsel %vm181_vm8, %v179_v8, %v380_v7  ;;  %v182_v22 = vsel %vm181_vm8, %v177_v25, %v381_v15 }
 0x17c   :  { %v156_v16 = vpop.permute.xlu2 %155 }
 0x182   :  { %v170_v9 = vpop.permute.xlu0 %169  ;;  %v140_v13 = vpop.permute.xlu1 %139 }
 0x183   :  { %v189_v12 = vsel %vm186_vm9, %v184_v11, %v170_v9  ;;  %v180_v17 = vsel %vm58_vm0, %v507_v28, %v140_v13 }
 0x184   :  { %229 = vmatmul.f32.vlgmr.msra.gmra.mxu3 %v189_v12  ;;  %v185_v26 = vsel %vm181_vm8, %v180_v17, %v156_v16  ;;  %v152_v32 = vpop.permute.xlu2 %151 }
 0x18a   :  { %v384_v18 = vpop.permute.xlu0 %383  ;;  %v136_v30 = vpop.permute.xlu1 %135 }
 0x18b   :  { %v386_v19 = vunpack.i.h.bf16 %v384_v18  ;;  %v385_v24 = vunpack.i.l.bf16 %v384_v18  ;;  %v178_v28 = vsel %vm58_vm0, %v493_v21, %v136_v30  ;;  %v288_v21 = vld [vmem:[%s670_s4 + $0x68] sm:$0xff]  ;;  %v388_v18 = vld [vmem:[%s671_s5] ss:$0 sm:$0xff]  ;;  %vm321_vm0 = vcmask 25600  }
 0x18c   :  { %v183_v33 = vsel %vm181_vm8, %v178_v28, %v152_v32  ;;  %303 = vmatpush.msra.mxu2 %v288_v21 }
 0x18d   :  { %v187_v27 = vsel %vm186_vm9, %v182_v22, %v385_v24  ;;  %v190_v29 = vsel %vm186_vm9, %v185_v26, %v386_v19 }
 0x18e   :  { %223 = vmatmul.f32.vlgmr.msra.gmra.mxu1 %v187_v27  ;;  %232 = vmatmul.f32.gmra.mxu3 %v190_v29 }
 0x18f   :  { %304 = vmatpush.msra.mxu2 %v287_v36 }
 0x191   :  { %305 = vmatpush.msra.mxu2 %v286_v37 }
 0x192   :  { %v168_v31 = vpop.permute.xlu0 %167 }
 0x193   :  { %v188_v20 = vsel %vm186_vm9, %v183_v33, %v168_v31  ;;  %306 = vmatpush.msra.mxu2 %v285_v38 }
 0x195   :  { %307 = vmatpush.msra.mxu2 %v284_v39 }
 0x196   :  { %226 = vmatmul.f32.gmra.mxu1 %v188_v20 }
 0x197   :  { %308 = vmatpush.msra.mxu2 %v283_v40 }
 0x199   :  { %309 = vmatpush.msra.mxu2 %v282_v41 }
 0x19b   :  { %310 = vmatpush.msra.mxu2 %v281_v42 }
 0x19d   :  { %311 = vmatpush.msra.mxu2 %v280_v43 }
 0x19f   :  { %312 = vmatpush.msra.mxu2 %v279_v44 }
 0x1a1   :  { %313 = vmatpush.msra.mxu2 %v278_v45 }
 0x1a3   :  { %314 = vmatpush.msra.mxu2 %v277_v46 }
 0x1a5   :  { %315 = vmatpush.msra.mxu2 %v276_v47 }
 0x1a7   :  { %316 = vmatpush.msra.mxu2 %v275_v50 }
 0x207   :  { %v230_v51 = vpop.f32.mrf.mxu3 }
 0x208   :  { %v251_v57 = vsel %vm243_vm13, %v230_v51, -inf }
 0x20b   :  { %v224_v53 = vpop.f32.mrf.mxu1 }
 0x20c   :  { %v249_v61 = vsel %vm243_vm13, %v224_v53, -inf }
 0x211   :  { %v233_v56 = vpop.f32.mrf.mxu3 }
 0x212   :  { %v252_v58 = vsel %vm244_vm14, %v233_v56, -inf }
 0x213   :  { %v260_v59 = vmax.f32 %v251_v57, %v252_v58  ;;  %v227_v60 = vpop.f32.mrf.mxu1 }
 0x214   :  { %v250_v62 = vsel %vm244_vm14, %v227_v60, -inf }
 0x215   :  { %v261_v63 = vrot.slane %v260_v59, 4  ;;  %v253_v0 = vmax.f32 %v249_v61, %v250_v62 }
 0x217   :  { %v262_v1 = vmax.f32 %v260_v59, %v261_v63  ;;  %v254_v2 = vrot.slane %v253_v0, 4 }
 0x219   :  { %v263_v10 = vrot.slane %v262_v1, 2  ;;  %v255_v3 = vmax.f32 %v253_v0, %v254_v2 }
 0x21b   :  { %v264_v4 = vmax.f32 %v262_v1, %v263_v10  ;;  %v256_v5 = vrot.slane %v255_v3, 2 }
 0x21d   :  { %v265_v6 = vrot.slane %v264_v4, 1  ;;  %v257_v7 = vmax.f32 %v255_v3, %v256_v5 }
 0x21f   :  { %v266_v8 = vmax.f32 %v264_v4, %v265_v6  ;;  %v258_v9 = vrot.slane %v257_v7, 1 }
 0x221   :  { %v259_v11 = vmax.f32 %v257_v7, %v258_v9  ;;  %v272_v12 = vadd.f32 %v387_v23, %v266_v8 }
 0x223   :  { %v271_v13 = vadd.f32 %v387_v23, %v259_v11  ;;  %v274_v14 = vmax.f32 %v272_v12, 0.0 }
 0x225   :  { %v273_v15 = vmax.f32 %v271_v13, 0.0  ;;  %v297_v16 = vrot.slane %v274_v14, 7 }
 0x227   :  { %v299_v17 = vsel %vm298_vm15, %v297_v16, %v273_v15 }
 0x228   :  { %317 = vmatmul.f32.vlgmr.msra.gmra.mxu2 %v299_v17 }
 0x2ab   :  { %v318_v19 = vpop.f32.mrf.mxu2 }
 0x2ac   :  { %v319_v24 = vadd.f32 %v388_v18, %v318_v19 }
 0x2ae   :  { %322 = vst.msk [vmem:[#allocation2] sm:$0x3] %vm321_vm0, %v319_v24 }
 0x2af   :  { %333 = dma.vmem_to_hbm [thread:$0]  %s329_s28, 32, %s331_s3, [#allocation3]  }
 0x2b0   :  { %413 = dma.done.wait [#allocation3], 32  }
 0x2b1   :  { %414 = vsyncadd [#allocation3], 4294967264 }
 0x2b2   :  { %338 = vsyncpa [#allocation3], 1 }

</bundles_post_ra>
